<compile_context>
chip_gen: v7x
topology: tpu7x:2x2x1
jax: 0.10.0
libtpu: 0.0.40
codegen_flags: <defaults>
</compile_context>

<pallas_src>
import math

import jax
import jax.numpy as jnp
from jax import lax
from jax.experimental import pallas as pl
from jax.experimental.pallas import tpu as pltpu


# -----------------------------------------------------------------------------
# Kernel body: one lane-dense MXU pass per (row-tile, head-group) grid cell.
# -----------------------------------------------------------------------------
def _headwise_kernel(x_ref, w_ref, b_ref, o_ref):
    # x_ref: (TM, KB)  row slab, lane-dense K slice (this head group's inputs)
    # w_ref: (KB, TN)  block-diagonal weight slice for this head group
    # b_ref: (1,  TN)  bias slice (f32)
    # o_ref: (TM, TN)  lane-dense output block
    y = lax.dot_general(
        x_ref[...], w_ref[...],
        dimension_numbers=(((1,), (0,)), ((), ())),
        preferred_element_type=jnp.float32,
    )
    o_ref[...] = (y + b_ref[...]).astype(o_ref.dtype)


# -----------------------------------------------------------------------------
# Static planning helpers.
# -----------------------------------------------------------------------------
def _round_up(n, m):
    return ((n + m - 1) // m) * m


def _sublane(dtype):
    # rows per sublane-aligned tile: f32 -> 8, bf16 -> 16, int8/fp8 -> 32
    return {4: 8, 2: 16, 1: 32}[jnp.dtype(dtype).itemsize]


def _vmem_budget_bytes():
    cap = 64 * 1024 * 1024                      # v7x physical -> safe fallback
    try:
        cap = int(getattr(pltpu.get_tpu_info(), "vmem_capacity_bytes", cap)) or cap
    except Exception:
        pass
    return (cap * 3) // 4                       # ~48 MiB v7x, ~96 MiB v5e/v6e


def _pick_group(num_heads, d, o, tn_target):
    """Heads-per-group g (proper divisor of num_heads) such that both the K
    slice (g*d) and the N tile (g*o) are 128-lane aligned, enabling (K,N)
    co-tiling. Returns None when no such split exists."""
    legal = [g for g in range(1, num_heads)
             if num_heads % g == 0 and (g * d) % 128 == 0 and (g * o) % 128 == 0]
    if not legal:
        return None
    small = [g for g in legal if g * o <= tn_target]
    return max(small) if small else min(legal)


def _pick_lane_tile(n_pad, target):
    """Largest 128-multiple divisor of n_pad that is <= target (n_pad % 128 == 0)."""
    best = 128
    k_total = n_pad // 128
    for k in range(1, max(target // 128, 1) + 1):
        if k_total % k == 0:
            best = 128 * k
    return min(best, n_pad)


def _plan_n(num_heads, d, o, tn_target=512):
    """-> (grouped, kb, tn, n_pad)."""
    out_features = num_heads * o
    g = _pick_group(num_heads, d, o, tn_target)
    if g is not None:
        return True, g * d, g * o, out_features
    n_pad = _round_up(out_features, 128)
    return False, num_heads * d, _pick_lane_tile(n_pad, tn_target), n_pad


def _pick_tm(m, kb, tn, x_isz, w_isz, out_isz, align, tm_target, budget):
    """Row tile derived from the double-buffered VMEM footprint."""
    def footprint(t):
        return (2 * t * kb * x_isz          # x input double buffer
                + 2 * t * tn * out_isz      # output double buffer
                + 2 * kb * tn * w_isz       # weight double buffer
                + 2 * tn * 4                # bias
                + (1 << 20))                # compiler-internal slack
    m_full = _round_up(m, align)
    if m <= tm_target:
        tm = m_full
    else:
        tm = align
        for cand in sorted({1024, tm_target, 512, 256, 128}, reverse=True):
            cand = min(_round_up(cand, align), m_full)
            if footprint(cand) <= budget:
                tm = cand
                break
    while tm > align and footprint(tm) > budget:
        tm = _round_up(max(tm // 2, align), align)
    return tm


# -----------------------------------------------------------------------------
# Parameter prep (hoist out of the per-step path when running under jit).
# -----------------------------------------------------------------------------
def prepare_headwise_params(weight, bias=None, *, io_dtype=None, tn_target=512):
    """Builds the lane-padded block-diagonal weight (H, n_pad) and the f32 bias
    (1, n_pad). Call once at parameter-prep time and pass the result via
    linear_headwise_expand(..., prepared=params) so this weight-sized
    construction is not re-materialized on every forward call."""
    num_heads, o, d = weight.shape
    H, out_features = num_heads * d, num_heads * o
    _, _, _, n_pad = _plan_n(num_heads, d, o, tn_target)

    w_dtype = jnp.dtype(io_dtype) if io_dtype is not None else weight.dtype
    w_bd = jnp.zeros((num_heads, d, num_heads, o), dtype=w_dtype)
    idx = jnp.arange(num_heads)
    w_bd = w_bd.at[idx, :, idx, :].set(
        jnp.transpose(weight, (0, 2, 1)).astype(w_dtype))
    w_bd = w_bd.reshape(H, out_features)
    if n_pad != out_features:
        w_bd = jnp.pad(w_bd, ((0, 0), (0, n_pad - out_features)))

    if bias is None:
        b2 = jnp.zeros((1, n_pad), dtype=jnp.float32)
    else:
        b2 = bias.reshape(1, out_features).astype(jnp.float32)
        if n_pad != out_features:
            b2 = jnp.pad(b2, ((0, 0), (0, n_pad - out_features)))
    return w_bd, b2


# -----------------------------------------------------------------------------
# Forward.
# -----------------------------------------------------------------------------
def linear_headwise_expand(x, weight, bias=None, *, prepared=None,
                           io_dtype=None, out_dtype=None,
                           tm_target=512, tn_target=512):
    """Pallas TPU forward of LinearHeadwiseExpand.

    x:        (B, S, H) with H = num_heads * d
    weight:   (num_heads, o, d)
    bias:     (num_heads * o,) or None
    prepared: optional output of prepare_headwise_params(weight, bias, ...)
    io_dtype: optional narrower dtype (e.g. jnp.bfloat16) for the x / weight
              HBM streams; MXU accumulation + bias add stay f32.
    out_dtype: output dtype (default x.dtype); bf16 halves the dominant output
              write stream when the consumer allows it.
    """
    B, S, H = x.shape
    num_heads, o, d = weight.shape
    assert H == num_heads * d, "in_features must equal num_heads * d"
    out_features = num_heads * o
    out_dtype = jnp.dtype(out_dtype) if out_dtype is not None else jnp.dtype(x.dtype)
    x_dtype = jnp.dtype(io_dtype) if io_dtype is not None else jnp.dtype(x.dtype)
    M = B * S

    # ---- static tiling plan -------------------------------------------------
    grouped, kb, tn, n_pad = _plan_n(num_heads, d, o, tn_target)
    n_n = n_pad // tn
    align = max(_sublane(x_dtype), _sublane(out_dtype))
    budget = _vmem_budget_bytes()
    tm = _pick_tm(M, kb, tn, x_dtype.itemsize, x_dtype.itemsize,
                  out_dtype.itemsize, align, tm_target, budget)
    m_pad = _round_up(M, tm)
    n_m = m_pad // tm

    # ---- operands (no HBM transposes; reshape is free) ----------------------
    x_flat = x.reshape(M, H).astype(x_dtype)
    if m_pad != M:
        x_flat = jnp.pad(x_flat, ((0, m_pad - M), (0, 0)))
    if prepared is None:
        w_bd, b2 = prepare_headwise_params(weight, bias, io_dtype=io_dtype,
                                           tn_target=tn_target)
    else:
        w_bd, b2 = prepared
    assert w_bd.shape == (H, n_pad) and b2.shape == (1, n_pad)

    # ---- grid / BlockSpecs ---------------------------------------------------
    if n_n == 1:
        # Single N tile: 1-D grid over rows so megacore sharding lands on M.
        grid = (n_m,)
        dims = ("parallel",)
        x_spec = pl.BlockSpec((tm, kb), lambda i: (i, 0))
        w_spec = pl.BlockSpec((kb, tn), lambda i: (0, 0))
        b_spec = pl.BlockSpec((1, tn), lambda i: (0, 0))
        o_spec = pl.BlockSpec((tm, tn), lambda i: (i, 0))
    elif grouped:
        # K tiled together with N on head-group boundaries: x read once,
        # MXU never sees the zero off-group blocks.
        grid = (n_n, n_m)
        dims = ("parallel", "parallel")
        x_spec = pl.BlockSpec((tm, kb), lambda j, i: (i, j))
        w_spec = pl.BlockSpec((kb, tn), lambda j, i: (j, j))
        b_spec = pl.BlockSpec((1, tn), lambda j, i: (0, j))
        o_spec = pl.BlockSpec((tm, tn), lambda j, i: (i, j))
    else:
        # No 128-aligned head grouping: full-K contraction, M inner so the
        # (H, tn) weight slice stays VMEM-resident across the row loop.
        grid = (n_n, n_m)
        dims = ("parallel", "parallel")
        x_spec = pl.BlockSpec((tm, kb), lambda j, i: (i, 0))
        w_spec = pl.BlockSpec((kb, tn), lambda j, i: (0, j))
        b_spec = pl.BlockSpec((1, tn), lambda j, i: (0, j))
        o_spec = pl.BlockSpec((tm, tn), lambda j, i: (i, j))

    cost = pl.CostEstimate(
        flops=2 * M * H * o,                 # true per-head contraction FLOPs
        transcendentals=0,
        bytes_accessed=(x_flat.size * x_flat.dtype.itemsize
                        + w_bd.size * w_bd.dtype.itemsize
                        + b2.size * b2.dtype.itemsize
                        + m_pad * n_pad * out_dtype.itemsize),
    )

    out_flat = pl.pallas_call(
        _headwise_kernel,
        out_shape=jax.ShapeDtypeStruct((m_pad, n_pad), out_dtype),
        grid_spec=pltpu.PrefetchScalarGridSpec(
            num_scalar_prefetch=0,
            grid=grid,
            in_specs=[x_spec, w_spec, b_spec],
            out_specs=o_spec,
        ),
        compiler_params=pltpu.CompilerParams(
            dimension_semantics=dims,
            vmem_limit_bytes=budget,
        ),
        cost_estimate=cost,
    )(x_flat, w_bd, b2)

    if m_pad != M or n_pad != out_features:
        out_flat = out_flat[:M, :out_features]
    return out_flat.reshape(B, S, out_features)


if __name__ == "__main__":
    # Module config (small, consistent with the forward pass): B=2, S=8,
    # in_features=32, num_heads=4, expand_factor_up=2.0 -> out_features=64.
    in_features, num_heads, expand_factor_up = 32, 4, 2.0
    B, S = 2, 8
    out_features = round(expand_factor_up * in_features)       # 64
    d = in_features // num_heads                                # 8
    o = out_features // num_heads                               # 16

    key = jax.random.PRNGKey(0)
    kx, kw, kx2, kw2, kb2 = jax.random.split(key, 5)

    # reset_parameters(): small_init normal weight, zero bias.
    std = math.sqrt(2.0 / 5.0 / d)
    weight = jax.random.normal(kw, (num_heads, o, d), dtype=jnp.float32) * std
    bias = jnp.zeros((out_features,), dtype=jnp.float32)
    x = jax.random.normal(kx, (B, S, in_features), dtype=jnp.float32)

    def ref_fwd(xx, ww, bb):
        Bq, Sq, _ = xx.shape
        nh, oo, dd = ww.shape
        y = jnp.einsum("bshd,hod->bsho", xx.reshape(Bq, Sq, nh, dd), ww)
        return y.reshape(Bq, Sq, nh * oo) + bb

    # 1) Default (dtype-preserving, f32) path.
    out = jax.block_until_ready(linear_headwise_expand(x, weight, bias))
    ref = ref_fwd(x, weight, bias)
    assert out.shape == (B, S, out_features)
    assert jnp.allclose(out, ref, atol=1e-5, rtol=1e-5)

    # 2) bf16-I/O path (halves HBM traffic; f32 accumulation), with the
    #    block-diagonal weight prepared ONCE (hoisted out of the forward).
    params_bf16 = prepare_headwise_params(weight, bias, io_dtype=jnp.bfloat16)
    out_bf = jax.block_until_ready(
        linear_headwise_expand(x, weight, bias, prepared=params_bf16,
                               io_dtype=jnp.bfloat16))
    assert jnp.allclose(out_bf, ref, atol=5e-2, rtol=5e-2)

    # 3) Head-grouped (K,N)-co-tiled path: num_heads=32, d=8, o=16 -> groups of
    #    16 heads give 128-lane-aligned K (128) and N (256) tiles.
    nh2, d2, o2 = 32, 8, 16
    w2 = jax.random.normal(kw2, (nh2, o2, d2), dtype=jnp.float32) * math.sqrt(2 / 5 / d2)
    b2v = jax.random.normal(kb2, (nh2 * o2,), dtype=jnp.float32) * 0.02
    x2 = jax.random.normal(kx2, (B, S, nh2 * d2), dtype=jnp.float32)
    out2 = jax.block_until_ready(linear_headwise_expand(x2, w2, b2v))
    ref2 = ref_fwd(x2, w2, b2v)
    assert out2.shape == (B, S, nh2 * o2)
    assert jnp.allclose(out2, ref2, atol=2e-3, rtol=2e-3)

    print("KERNEL_OK")
</pallas_src>

<mosaic_0001>
module attributes {stable_mosaic.version = 11 : i64} {
  func.func @_headwise_kernel(%arg0: i32, %arg1: memref<16x32xf32, #tpu.memory_space<vmem>>, %arg2: memref<32x128xf32, #tpu.memory_space<vmem>>, %arg3: memref<1x128xf32, #tpu.memory_space<vmem>>, %arg4: memref<16x128xf32, #tpu.memory_space<vmem>>) attributes {dimension_semantics = [#tpu.dimension_semantics<parallel>], iteration_bounds = array<i64: 1>, scalar_prefetch = 0 : i64, scratch_operands = 0 : i64, tpu.core_type = #tpu.core_type<tc>, window_params = [{transform_indices = @transform_0, window_bounds = array<i64: 16, 32>}, {pipeline_mode = #tpu.pipeline_mode<synchronous>, transform_indices = @transform_1, window_bounds = array<i64: 32, 128>}, {pipeline_mode = #tpu.pipeline_mode<synchronous>, transform_indices = @transform_2, window_bounds = array<i64: 1, 128>}, {transform_indices = @transform_3, window_bounds = array<i64: 16, 128>}]} {
    %c0 = arith.constant 0 : index
    %c0_0 = arith.constant 0 : index
    %0 = vector.load %arg1[%c0, %c0_0] : memref<16x32xf32, #tpu.memory_space<vmem>>, vector<16x32xf32>
    %c0_1 = arith.constant 0 : index
    %c0_2 = arith.constant 0 : index
    %1 = vector.load %arg2[%c0_1, %c0_2] : memref<32x128xf32, #tpu.memory_space<vmem>>, vector<32x128xf32>
    %cst = arith.constant dense<0.000000e+00> : vector<16x128xf32>
    %2 = tpu.matmul %0, %1, %cst {dimension_numbers = #tpu.dot_dimension_numbers<[1], [0], [0], [1], [0, 0, 1, 1], [], []>} : vector<16x32xf32>, vector<32x128xf32>, vector<16x128xf32> -> vector<16x128xf32>
    %c0_3 = arith.constant 0 : index
    %c0_4 = arith.constant 0 : index
    %3 = vector.load %arg3[%c0_3, %c0_4] : memref<1x128xf32, #tpu.memory_space<vmem>>, vector<1x128xf32>
    %4 = vector.broadcast %3 : vector<1x128xf32> to vector<16x128xf32>
    %5 = arith.addf %2, %4 : vector<16x128xf32>
    %c0_5 = arith.constant 0 : index
    %c0_6 = arith.constant 0 : index
    %6 = vector.load %arg4[%c0_5, %c0_6] : memref<16x128xf32, #tpu.memory_space<vmem>>, vector<16x128xf32>
    tpu.vector_store %arg4[%c0_5, %c0_6], %5 {strides = array<i32>} : memref<16x128xf32, #tpu.memory_space<vmem>>, vector<16x128xf32>,
    return
  }
  func.func @transform_0(%arg0: i32) -> (i32, i32) {
    %c0_i32 = arith.constant 0 : i32
    %c0_i32_0 = arith.constant 0 : i32
    return %arg0, %c0_i32 : i32, i32
  }
  func.func @transform_1(%arg0: i32) -> (i32, i32) {
    %c0_i32 = arith.constant 0 : i32
    %c0_i32_0 = arith.constant 0 : i32
    %c0_i32_1 = arith.constant 0 : i32
    return %c0_i32, %c0_i32_0 : i32, i32
  }
  func.func @transform_2(%arg0: i32) -> (i32, i32) {
    %c0_i32 = arith.constant 0 : i32
    %c0_i32_0 = arith.constant 0 : i32
    %c0_i32_1 = arith.constant 0 : i32
    return %c0_i32, %c0_i32_0 : i32, i32
  }
  func.func @transform_3(%arg0: i32) -> (i32, i32) {
    %c0_i32 = arith.constant 0 : i32
    %c0_i32_0 = arith.constant 0 : i32
    return %arg0, %c0_i32 : i32, i32
  }
}

</mosaic_0001>

<bundles_post_ra>
// kernel: tpu_custom_call.1
= control target key start
LH: loop header
LB: loop body
LE: loop exit
PB: predicated region body
PF: predicated region fallthrough
CT: control target
= control target key end

     0   :  { %8 = vsyncpa [#allocation3], 0  ;;  %s336_s0 = inlined_call_operand.hbm [shape: f32[16,32], index: 0, kind: input, shape index: {}]   ;;  %s337_s1 = inlined_call_operand.hbm [shape: f32[32,128], index: 1, kind: input, shape index: {}]   ;;  %s338_s2 = inlined_call_operand.vmem [shape: f32[1,128], index: 2, kind: input, shape index: {}]   ;;  %s339_s3 = inlined_call_operand.hbm [shape: f32[16,128], index: 3, kind: output, shape index: {}]  }
   0x1   :  { %9 = vsyncpa [#allocation6], 0 }
   0x2   :  { %10 = vsyncpa [#allocation4], 0  ;;  %s263_s12 = smov [#allocation2]   ;;  %s191_s16 = scalar_lea.hbm %s336_s0, 256 }
   0x3   :  { %s16_s13 = sshll.u32 %s263_s12, 4  ;;  %p192_p0 = scmp.ne.s32.totalorder %s336_s0, %s191_s16  ;;  %s17_s13 = int_to_ptr.vmem [resolvable:$true] %s16_s13 }
   0x4   :  { %p195_p1 = scmp.lt.u32.totalorder %s191_s16, %s336_s0 }
   0x6   :  { %p197_p2 = pnand %p195_p1, %p192_p0 }
   0x8   :  { %200 = shalt.err (!%p197_p2)
}
   0x9   :  { %s201_s21 = scalar_lea.vmem %s17_s13, 256  ;;  %p206_p4 = scmp.lt.s32.totalorder %s17_s13, %s17_s13 }
   0xa   :  { %p202_p3 = scmp.ne.s32.totalorder %s17_s13, %s201_s21  ;;  %p207_p5 = scmp.lt.s32.totalorder %s201_s21, %s201_s21 }
   0xc   :  { %p208_p6 = por %p207_p5, %p206_p4 }
   0xe   :  { %p209_p7 = pnand %p208_p6, %p202_p3 }
  0x10   :  { %212 = shalt.err (!%p209_p7)
}
  0x11   :  { %s264_s22 = smov 128   ;;  %s265_s23 = smov 8  }
  0x12   :  { %22 = dma.hbm_to_vmem [thread:$0]  %s336_s0, 256, %s17_s13, [#allocation3], %s264_s22, %s264_s22, %s265_s23  }
  0x13   :  { %s266_s26 = smov [#allocation5]   ;;  %s213_s30 = scalar_lea.hbm %s337_s1, 512 }
  0x14   :  { %s28_s27 = sshll.u32 %s266_s26, 4  ;;  %p214_p8 = scmp.ne.s32.totalorder %s337_s1, %s213_s30  ;;  %s29_s27 = int_to_ptr.vmem [resolvable:$true] %s28_s27 }
  0x15   :  { %p217_p9 = scmp.lt.u32.totalorder %s213_s30, %s337_s1 }
  0x17   :  { %p219_p10 = pnand %p217_p9, %p214_p8 }
  0x19   :  { %222 = shalt.err (!%p219_p10)
}
  0x1a   :  { %s223_s8 = scalar_lea.vmem %s29_s27, 512  ;;  %p228_p12 = scmp.lt.s32.totalorder %s29_s27, %s29_s27 }
  0x1b   :  { %p224_p11 = scmp.ne.s32.totalorder %s29_s27, %s223_s8  ;;  %p229_p13 = scmp.lt.s32.totalorder %s223_s8, %s223_s8 }
  0x1d   :  { %p230_p0 = por %p229_p13, %p228_p12 }
  0x1f   :  { %p231_p1 = pnand %p230_p0, %p224_p11 }
  0x21   :  { %234 = shalt.err (!%p231_p1)
}
  0x22   :  { %34 = dma.hbm_to_vmem [thread:$0]  %s337_s1, 512, %s29_s27, [#allocation6], %s264_s22, %s264_s22, %s265_s23  }
  0x23   :  { %257 = dma.done.wait [#allocation3], 256  }
  0x24   :  { %258 = vsyncadd [#allocation3], 4294967040 }
  0x25   :  { %259 = dma.done.wait [#allocation6], 512  }
  0x26   :  { %260 = vsyncadd [#allocation6], 4294966784  ;;  %vm56_vm0 = vcmask 261120   ;;  %v45_v0 = vld [vmem:[#allocation5] sm:$0xff]  ;;  %v46_v1 = vld [vmem:[#allocation5 + $0x8] sm:$0xff]  ;;  %s267_s11 = smov [#allocation7]  }
  0x27   :  { %v47_v2 = vld [vmem:[#allocation5 + $0x10] sm:$0xff]  ;;  %v178_v3 = vpack.c.bf16 %v46_v1, %v45_v0  ;;  %v48_v4 = vld [vmem:[#allocation5 + $0x18] sm:$0xff]  ;;  %s145_s12 = sshll.u32 %s267_s11, 4  ;;  %s146_s12 = int_to_ptr.vmem [resolvable:$true] %s145_s12 }
  0x28   :  { %v43_v5 = vld [vmem:[#allocation2] sm:$0xff]  ;;  %v182_v6 = vpack.c.bf16 %v48_v4, %v47_v2  ;;  %v44_v7 = vld [vmem:[#allocation2 + $0x8] sm:$0xff]  ;;  %s235_s13 = scalar_lea.vmem %s146_s12, 256  ;;  %p240_p3 = scmp.lt.s32.totalorder %s146_s12, %s146_s12 }
  0x29   :  { %175 = vmatprep.mubr.msk.f32.mxu0 %vm56_vm0, %v43_v5  ;;  %179 = vmatprep.subr.bf16.mxu0 %v178_v3  ;;  %v158_v8 = vld [vmem:[%s338_s2] ss:$0 sm:$0xff]  ;;  %p236_p2 = scmp.ne.s32.totalorder %s146_s12, %s235_s13  ;;  %p241_p4 = scmp.lt.s32.totalorder %s235_s13, %s235_s13 }
  0x2a   :  { %181 = vmatpush3.bf16.msra.mxu0 %v178_v3 }
  0x2b   :  { %183 = vmatprep.subr.bf16.mxu0 %v182_v6  ;;  %p242_p5 = por %p241_p4, %p240_p3 }
  0x2d   :  { %p243_p6 = pnand %p242_p5, %p236_p2 }
  0x2e   :  { %185 = vmatpush3.bf16.msra.mxu0 %v182_v6 }
  0x31   :  { %176 = vmatmul.mubr.msk.f32.vlgmr.msra.gmra.mrb[0].mxu0 %vm56_vm0, %v44_v7 }
 0x104   :  { %v177_v9 = vpop.f32.mrb[0].mxu0 }
 0x105   :  { %v135_v10 = vadd.f32 %v177_v9, %v158_v8  ;;  %v129_v11 = vpop.f32.mrb[1].mxu0 }
 0x106   :  { %v130_v12 = vadd.f32 %v158_v8, %v129_v11 }
 0x107   :  { %139 = vst [vmem:[#allocation7 + $0x8] sm:$0xff] %v135_v10 }
 0x108   :  { %138 = vst [vmem:[#allocation7] sm:$0xff] %v130_v12 }
 0x109   :  { %246 = shalt.err (!%p243_p6)
}
 0x10a   :  { %s247_s2 = scalar_lea.hbm %s339_s3, 256 }
 0x10b   :  { %p248_p7 = scmp.ne.s32.totalorder %s339_s3, %s247_s2  ;;  %p251_p8 = scmp.lt.u32.totalorder %s247_s2, %s339_s3 }
 0x10d   :  { %p253_p9 = pnand %p251_p8, %p248_p7 }
 0x10f   :  { %256 = shalt.err (!%p253_p9)
}
 0x110   :  { %151 = dma.vmem_to_hbm [thread:$0]  %s146_s12, 256, %s339_s3, [#allocation4], %s264_s22, %s264_s22, %s265_s23  }
 0x111   :  { %261 = dma.done.wait [#allocation4], 256  }
 0x112   :  { %262 = vsyncadd [#allocation4], 4294967040 }
 0x113   :  { %155 = vsyncpa [#allocation3], 1 }
 0x114   :  { %156 = vsyncpa [#allocation6], 1 }
 0x115   :  { %157 = vsyncpa [#allocation4], 1 }

</bundles_post_ra>
